<compile_context>
chip_gen: v7x
topology: tpu7x:2x2x1
jax: 0.10.0
libtpu: 0.0.40
codegen_flags: <defaults>
</compile_context>

<pallas_src>
import jax
import jax.numpy as jnp
from jax.experimental import pallas as pl
from jax.experimental.pallas import tpu as pltpu


def _mylossv2_kernel(logits_ref, pred_ref, diff_ref, label_ref,
                     ce_ref, ruc_ref, junc_ref, mae_ref,
                     ce_sc, ruc_sc, junc_sc, mae_sc):
    """Per-(split, batch) CE / masked-L1 partial sums over one N tile."""
    nt = pl.program_id(2)
    last = pl.num_programs(2) - 1

    @pl.when(nt == 0)
    def _init():
        ce_sc[...] = jnp.zeros_like(ce_sc)
        ruc_sc[...] = jnp.zeros_like(ruc_sc)
        junc_sc[...] = jnp.zeros_like(junc_sc)
        mae_sc[...] = jnp.zeros_like(mae_sc)

    logits = logits_ref[...]                       # (C, TN) f32
    labels = label_ref[...]                        # (1, TN) i32, values in [0, C)
    mask = labels.astype(jnp.float32)              # (1, TN)

    # ---------------- CrossEntropy: per-lane -log_softmax[label] ----------------
    C = logits.shape[0]
    if C == 2:
        # Binary fast path: one exp per point (lse = max + log(1 + exp(min - max))).
        a = logits[0:1, :]
        b = logits[1:2, :]
        hi = jnp.maximum(a, b)
        lo = jnp.minimum(a, b)
        lse = hi + jnp.log(1.0 + jnp.exp(lo - hi))                       # (1, TN)
        selected = jnp.where(labels == 1, b, a)                          # (1, TN)
    else:
        m = jnp.max(logits, axis=0, keepdims=True)                       # (1, TN)
        lse = jnp.log(jnp.sum(jnp.exp(logits - m), axis=0, keepdims=True)) + m
        cls_iota = jax.lax.broadcasted_iota(jnp.int32, logits.shape, 0)  # (C, TN)
        selected = jnp.sum(jnp.where(cls_iota == labels, logits, 0.0),
                           axis=0, keepdims=True)                        # (1, TN)
    ce_sc[...] += lse - selected                                         # (1, TN)

    # ---------------- masked L1 regression (channel-major, lane-dense) ----------------
    tgt = diff_ref[...] * mask                     # (3, TN)  (target - fps) * label
    prd = pred_ref[...] * mask                     # (3, TN)
    per_elem = jnp.abs(prd - tgt)                  # (3, TN)
    per_point = jnp.sum(per_elem, axis=0, keepdims=True)                 # (1, TN)

    ruc_sc[...] += per_point * mask                # (1, TN)
    junc_sc[...] += mask                           # (1, TN)
    mae_sc[...] += per_elem                        # (3, TN)

    # ---- single cross-lane reduction at the last N tile of this (split, batch) ----
    @pl.when(nt == last)
    def _fin():
        ce_ref[...] = jnp.sum(ce_sc[...], keepdims=True)                 # (1, 1)
        ruc_ref[...] = jnp.sum(ruc_sc[...], keepdims=True)               # (1, 1)
        junc_ref[...] = jnp.sum(junc_sc[...], keepdims=True)             # (1, 1)
        mae_ref[...] = jnp.sum(mae_sc[...], axis=1, keepdims=True)       # (3, 1)


def _pick_tile_n(N, C, target=8192, vmem_budget_bytes=20 * 1024 * 1024):
    """Largest multiple-of-128 divisor of N that fits the VMEM budget (<= target)."""
    # Double-buffered f32 input streams (logits C + pred 3 + diff 3 + labels 1)
    # plus the 4 persistent per-lane scratch accumulators (8 padded sublanes each).
    per_lane_bytes = 2 * 4 * (C + 7) + 4 * 8 * 4
    cap = max(128, (vmem_budget_bytes // per_lane_bytes) // 128 * 128)
    target = min(target, cap)
    if N <= target:
        return N
    t = (target // 128) * 128
    while t >= 128:
        if N % t == 0:
            return t
        t -= 128
    return N


def mylossv2_forward(logits, predXYZ, targetXYZ, classifyLabel, fpsXYZ,
                     stage="l2", tile_n=None, n_splits=1):
    """JAX/Pallas equivalent of MylossV2.forward.

    n_splits > 1 adds a leading 'parallel' grid axis that splits the N
    reduction into per-split partial sums (helps v7x's 2 TensorCores when B is
    small or odd); the tiny partials are summed in the wrapper.
    """
    logits = logits.astype(jnp.float32)
    B, C, N = logits.shape

    labels_i = classifyLabel.astype(jnp.int32)                       # (B, N)
    mask_f = labels_i.astype(jnp.float32)                            # (B, N)

    # ---------------- layout glue (plain XLA; each line fuses into one HBM pass) ----------------
    # fps subtraction fused into the channel-major transpose feeding the kernel:
    diff_cm = jnp.transpose(
        (targetXYZ.astype(jnp.float32) - fpsXYZ.astype(jnp.float32)), (0, 2, 1))  # (B, 3, N)
    pred_cm = predXYZ.astype(jnp.float32)                            # (B, 3, N) native layout
    labels3 = labels_i[:, None, :]                                   # (B, 1, N)
    # TODO(synk): labels could travel as int8 (~4% less HBM read); kept int32 to avoid
    # relying on Mosaic's 1-sublane packed-int window layout.

    # The module's big (B, N, 3) outputs never round-trip through the kernel: they are
    # produced directly from the inputs (no permute of kernel outputs at all).
    tgt_out = (targetXYZ.astype(jnp.float32) - fpsXYZ.astype(jnp.float32)) \
        * mask_f[:, :, None]                                         # (B, N, 3)
    prd_out = jnp.transpose(pred_cm, (0, 2, 1)) * mask_f[:, :, None]  # (B, N, 3)

    tn = tile_n if tile_n is not None else _pick_tile_n(N, C)
    assert N % tn == 0, f"tile_n={tn} must divide N={N}"
    n_tiles = N // tn
    assert n_tiles % n_splits == 0, f"n_splits={n_splits} must divide n_tiles={n_tiles}"
    tps = n_tiles // n_splits                                        # tiles per split

    def in_spec(block_c):
        return pl.BlockSpec((None, block_c, tn),
                            lambda s, b, n: (b, 0, s * tps + n))

    in_specs = [
        in_spec(C),     # logits      (B, C, N)
        in_spec(3),     # predXYZ     (B, 3, N)
        in_spec(3),     # target-fps  (B, 3, N)
        in_spec(1),     # labels      (B, 1, N)
    ]
    acc11 = pl.BlockSpec((None, None, 1, 1), lambda s, b, n: (s, b, 0, 0))
    out_specs = (
        acc11,                                                           # CE sum
        acc11,                                                           # masked-L1 sum
        acc11,                                                           # junction count
        pl.BlockSpec((None, None, 3, 1), lambda s, b, n: (s, b, 0, 0)),  # per-coord MAE sum
    )
    out_shape = (
        jax.ShapeDtypeStruct((n_splits, B, 1, 1), jnp.float32),
        jax.ShapeDtypeStruct((n_splits, B, 1, 1), jnp.float32),
        jax.ShapeDtypeStruct((n_splits, B, 1, 1), jnp.float32),
        jax.ShapeDtypeStruct((n_splits, B, 3, 1), jnp.float32),
    )

    # Kernel-only traffic (wrapper-side fused passes are separate XLA ops).
    bytes_accessed = 4 * (B * C * N + 2 * B * 3 * N + B * N + n_splits * B * 6)
    cost = pl.CostEstimate(
        flops=B * N * (2 * C + 24),
        transcendentals=B * N * (2 if C == 2 else C + 1),
        bytes_accessed=bytes_accessed,
    )

    ce_p, ruc_p, junc_p, mae_p = pl.pallas_call(
        _mylossv2_kernel,
        grid=(n_splits, B, tps),
        in_specs=in_specs,
        out_specs=out_specs,
        out_shape=out_shape,
        scratch_shapes=[
            pltpu.VMEM((1, tn), jnp.float32),   # per-lane CE accumulator
            pltpu.VMEM((1, tn), jnp.float32),   # per-lane masked-L1 accumulator
            pltpu.VMEM((1, tn), jnp.float32),   # per-lane junction-count accumulator
            pltpu.VMEM((3, tn), jnp.float32),   # per-lane per-coordinate MAE accumulator
        ],
        compiler_params=pltpu.CompilerParams(
            dimension_semantics=("parallel", "parallel", "arbitrary"),
            vmem_limit_bytes=32 * 1024 * 1024,  # safe within v7x's 64 MiB physical VMEM
        ),
        cost_estimate=cost,
    )(logits, pred_cm, diff_cm, labels3)

    # ---------------- tiny O(B) finalization: combine splits + normalize ----------------
    junc = jnp.sum(junc_p, axis=0).reshape(B)
    ruc = jnp.sum(ruc_p, axis=0).reshape(B)
    mae = jnp.sum(mae_p, axis=0).reshape(B, 3)

    loss_cls = jnp.sum(ce_p) / float(B * N)          # CE mean over all B*N points
    # NOTE: like the PyTorch module, a batch with zero positive labels yields Inf/NaN.
    loss_ruc = jnp.mean(ruc / junc)
    loss = loss_ruc * 10.0 + loss_cls

    return {
        stage + "_lossCls": loss_cls,
        stage + "_lossRuc": loss_ruc,
        stage + "_loss": loss,
        stage + "_targetXYZ": tgt_out,
        stage + "_predXYZ": prd_out,
        stage + "_logits": logits,
        stage + "_mae_loss": mae / junc[:, None],
    }


def _reference(logits, predXYZ, targetXYZ, classifyLabel, fpsXYZ):
    """Pure-JAX reference (mirrors the PyTorch module) for a sanity check."""
    mask = classifyLabel.astype(jnp.float32)
    logp = jax.nn.log_softmax(logits, axis=1)                     # (B, C, N)
    sel = jnp.take_along_axis(logp, classifyLabel[:, None, :], axis=1)[:, 0, :]
    loss_cls = -jnp.mean(sel)
    tgt = (targetXYZ - fpsXYZ) * mask[:, :, None]
    prd = jnp.transpose(predXYZ, (0, 2, 1)) * mask[:, :, None]
    per_elem = jnp.abs(prd - tgt)
    junc = jnp.sum(mask, axis=-1)
    ruc = jnp.sum(jnp.sum(per_elem, axis=-1) * mask, axis=-1)
    loss_ruc = jnp.mean(ruc / junc)
    mae = jnp.sum(per_elem, axis=1) / junc[:, None]
    return loss_cls, loss_ruc, tgt, prd, mae


if __name__ == "__main__":
    B, C, N = 2, 2, 256   # batch, num classes, num points

    key = jax.random.PRNGKey(0)
    k1, k2, k3, k4, k5 = jax.random.split(key, 5)

    logits = jax.random.normal(k1, (B, C, N), dtype=jnp.float32)
    predXYZ = jax.random.normal(k2, (B, 3, N), dtype=jnp.float32)
    targetXYZ = jax.random.normal(k3, (B, N, 3), dtype=jnp.float32)
    fpsXYZ = jax.random.normal(k4, (B, N, 3), dtype=jnp.float32)
    classifyLabel = jax.random.bernoulli(k5, 0.5, (B, N)).astype(jnp.int32)
    # Same implicit precondition as the PyTorch module: at least one positive
    # label per batch so the per-batch junction count is nonzero.
    classifyLabel = classifyLabel.at[:, 0].set(1)

    ref_cls, ref_ruc, ref_tgt, ref_prd, ref_mae = _reference(
        logits, predXYZ, targetXYZ, classifyLabel, fpsXYZ)

    def check(out):
        assert jnp.allclose(out["l2_lossCls"], ref_cls, atol=1e-5)
        assert jnp.allclose(out["l2_lossRuc"], ref_ruc, atol=1e-5)
        assert jnp.allclose(out["l2_loss"], ref_ruc * 10 + ref_cls, atol=1e-4)
        assert jnp.allclose(out["l2_targetXYZ"], ref_tgt, atol=1e-5)
        assert jnp.allclose(out["l2_predXYZ"], ref_prd, atol=1e-5)
        assert jnp.allclose(out["l2_mae_loss"], ref_mae, atol=1e-5)

    # tile_n=128 -> grid (1, B=2, 2): exercises the accumulate/finalize path.
    out = jax.block_until_ready(
        mylossv2_forward(logits, predXYZ, targetXYZ, classifyLabel, fpsXYZ,
                         stage="l2", tile_n=128))
    check(out)

    # v7x-style core split of the N reduction: per-split partial sums combined
    # in the wrapper (grid (2, B, 1)).
    out2 = jax.block_until_ready(
        mylossv2_forward(logits, predXYZ, targetXYZ, classifyLabel, fpsXYZ,
                         stage="l2", tile_n=128, n_splits=2))
    check(out2)

    print("KERNEL_OK")
</pallas_src>

<mosaic_0001>
module attributes {stable_mosaic.version = 11 : i64} {
  func.func @_mylossv2_kernel(%arg0: i32, %arg1: i32, %arg2: i32, %arg3: memref<1x2x128xf32, #tpu.memory_space<vmem>>, %arg4: memref<1x3x128xf32, #tpu.memory_space<vmem>>, %arg5: memref<1x3x128xf32, #tpu.memory_space<vmem>>, %arg6: memref<1x1x128xi32, #tpu.memory_space<vmem>>, %arg7: memref<1x1x1x1xf32, #tpu.memory_space<vmem>>, %arg8: memref<1x1x1x1xf32, #tpu.memory_space<vmem>>, %arg9: memref<1x1x1x1xf32, #tpu.memory_space<vmem>>, %arg10: memref<1x1x3x1xf32, #tpu.memory_space<vmem>>, %arg11: memref<1x128xf32, #tpu.memory_space<vmem>>, %arg12: memref<1x128xf32, #tpu.memory_space<vmem>>, %arg13: memref<1x128xf32, #tpu.memory_space<vmem>>, %arg14: memref<3x128xf32, #tpu.memory_space<vmem>>) attributes {dimension_semantics = [#tpu.dimension_semantics<parallel>, #tpu.dimension_semantics<parallel>, #tpu.dimension_semantics<arbitrary>], iteration_bounds = array<i64: 1, 2, 2>, scalar_prefetch = 0 : i64, scratch_operands = 4 : i64, tpu.core_type = #tpu.core_type<tc>, window_params = [{transform_indices = @transform_0, window_bounds = array<i64: 1, 2, 128>}, {transform_indices = @transform_1, window_bounds = array<i64: 1, 3, 128>}, {transform_indices = @transform_2, window_bounds = array<i64: 1, 3, 128>}, {transform_indices = @transform_3, window_bounds = array<i64: 1, 1, 128>}, {transform_indices = @transform_4, window_bounds = array<i64: 1, 1, 1, 1>}, {transform_indices = @transform_5, window_bounds = array<i64: 1, 1, 1, 1>}, {transform_indices = @transform_6, window_bounds = array<i64: 1, 1, 1, 1>}, {transform_indices = @transform_7, window_bounds = array<i64: 1, 1, 3, 1>}]} {
    %c0_i32 = arith.constant 0 : i32
    %0 = arith.cmpi eq, %arg2, %c0_i32 : i32
    %1 = arith.extui %0 : i1 to i32
    %c0_i32_0 = arith.constant 0 : i32
    %2 = arith.cmpi ne, %1, %c0_i32_0 : i32
    scf.if %2 {
      %cst_31 = arith.constant 0.000000e+00 : f32
      %50 = vector.broadcast %cst_31 : f32 to vector<1x128xf32>
      %c0_32 = arith.constant 0 : index
      %c0_33 = arith.constant 0 : index
      %51 = vector.load %arg11[%c0_32, %c0_33] : memref<1x128xf32, #tpu.memory_space<vmem>>, vector<1x128xf32>
      tpu.vector_store %arg11[%c0_32, %c0_33], %50 {strides = array<i32>} : memref<1x128xf32, #tpu.memory_space<vmem>>, vector<1x128xf32>,
      %cst_34 = arith.constant 0.000000e+00 : f32
      %52 = vector.broadcast %cst_34 : f32 to vector<1x128xf32>
      %c0_35 = arith.constant 0 : index
      %c0_36 = arith.constant 0 : index
      %53 = vector.load %arg12[%c0_35, %c0_36] : memref<1x128xf32, #tpu.memory_space<vmem>>, vector<1x128xf32>
      tpu.vector_store %arg12[%c0_35, %c0_36], %52 {strides = array<i32>} : memref<1x128xf32, #tpu.memory_space<vmem>>, vector<1x128xf32>,
      %cst_37 = arith.constant 0.000000e+00 : f32
      %54 = vector.broadcast %cst_37 : f32 to vector<1x128xf32>
      %c0_38 = arith.constant 0 : index
      %c0_39 = arith.constant 0 : index
      %55 = vector.load %arg13[%c0_38, %c0_39] : memref<1x128xf32, #tpu.memory_space<vmem>>, vector<1x128xf32>
      tpu.vector_store %arg13[%c0_38, %c0_39], %54 {strides = array<i32>} : memref<1x128xf32, #tpu.memory_space<vmem>>, vector<1x128xf32>,
      %cst_40 = arith.constant 0.000000e+00 : f32
      %56 = vector.broadcast %cst_40 : f32 to vector<3x128xf32>
      %c0_41 = arith.constant 0 : index
      %c0_42 = arith.constant 0 : index
      %57 = vector.load %arg14[%c0_41, %c0_42] : memref<3x128xf32, #tpu.memory_space<vmem>>, vector<3x128xf32>
      tpu.vector_store %arg14[%c0_41, %c0_42], %56 {strides = array<i32>} : memref<3x128xf32, #tpu.memory_space<vmem>>, vector<3x128xf32>,
    } else {
    }
    %c0 = arith.constant 0 : index
    %c0_1 = arith.constant 0 : index
    %c0_2 = arith.constant 0 : index
    %3 = vector.load %arg3[%c0, %c0_1, %c0_2] : memref<1x2x128xf32, #tpu.memory_space<vmem>>, vector<1x2x128xf32>
    %4 = vector.shape_cast %3 : vector<1x2x128xf32> to vector<2x128xf32>
    %c0_3 = arith.constant 0 : index
    %c0_4 = arith.constant 0 : index
    %c0_5 = arith.constant 0 : index
    %5 = vector.load %arg6[%c0_3, %c0_4, %c0_5] : memref<1x1x128xi32, #tpu.memory_space<vmem>>, vector<1x1x128xi32>
    %6 = vector.shape_cast %5 : vector<1x1x128xi32> to vector<1x128xi32>
    %7 = arith.sitofp %6 : vector<1x128xi32> to vector<1x128xf32>
    %8 = vector.extract_strided_slice %4 {offsets = [0, 0], sizes = [1, 128], strides = [1, 1]} : vector<2x128xf32> to vector<1x128xf32>
    %9 = vector.extract_strided_slice %4 {offsets = [1, 0], sizes = [1, 128], strides = [1, 1]} : vector<2x128xf32> to vector<1x128xf32>
    %10 = arith.maximumf %8, %9 : vector<1x128xf32>
    %11 = arith.minimumf %8, %9 : vector<1x128xf32>
    %12 = arith.subf %11, %10 : vector<1x128xf32>
    %13 = math.exp %12 : vector<1x128xf32>
    %cst = arith.constant 1.000000e+00 : f32
    %14 = vector.broadcast %cst : f32 to vector<1x128xf32>
    %15 = arith.addf %14, %13 : vector<1x128xf32>
    %16 = math.log %15 : vector<1x128xf32>
    %17 = arith.addf %10, %16 : vector<1x128xf32>
    %c1_i32 = arith.constant 1 : i32
    %18 = vector.broadcast %c1_i32 : i32 to vector<1x128xi32>
    %19 = arith.cmpi eq, %6, %18 : vector<1x128xi32>
    %20 = arith.select %19, %9, %8 : vector<1x128xi1>, vector<1x128xf32>
    %c0_6 = arith.constant 0 : index
    %c0_7 = arith.constant 0 : index
    %21 = vector.load %arg11[%c0_6, %c0_7] : memref<1x128xf32, #tpu.memory_space<vmem>>, vector<1x128xf32>
    %22 = arith.subf %17, %20 : vector<1x128xf32>
    %23 = arith.addf %21, %22 : vector<1x128xf32>
    %c0_8 = arith.constant 0 : index
    %c0_9 = arith.constant 0 : index
    %24 = vector.load %arg11[%c0_8, %c0_9] : memref<1x128xf32, #tpu.memory_space<vmem>>, vector<1x128xf32>
    tpu.vector_store %arg11[%c0_8, %c0_9], %23 {strides = array<i32>} : memref<1x128xf32, #tpu.memory_space<vmem>>, vector<1x128xf32>,
    %c0_10 = arith.constant 0 : index
    %c0_11 = arith.constant 0 : index
    %c0_12 = arith.constant 0 : index
    %25 = vector.load %arg5[%c0_10, %c0_11, %c0_12] : memref<1x3x128xf32, #tpu.memory_space<vmem>>, vector<1x3x128xf32>
    %26 = vector.shape_cast %25 : vector<1x3x128xf32> to vector<3x128xf32>
    %27 = vector.broadcast %7 : vector<1x128xf32> to vector<3x128xf32>
    %28 = arith.mulf %26, %27 : vector<3x128xf32>
    %c0_13 = arith.constant 0 : index
    %c0_14 = arith.constant 0 : index
    %c0_15 = arith.constant 0 : index
    %29 = vector.load %arg4[%c0_13, %c0_14, %c0_15] : memref<1x3x128xf32, #tpu.memory_space<vmem>>, vector<1x3x128xf32>
    %30 = vector.shape_cast %29 : vector<1x3x128xf32> to vector<3x128xf32>
    %31 = vector.broadcast %7 : vector<1x128xf32> to vector<3x128xf32>
    %32 = arith.mulf %30, %31 : vector<3x128xf32>
    %33 = arith.subf %32, %28 : vector<3x128xf32>
    %34 = math.absf %33 : vector<3x128xf32>
    %cst_16 = arith.constant dense<0.000000e+00> : vector<128xf32>
    %35 = vector.multi_reduction <add>, %34, %cst_16 [0] : vector<3x128xf32> to vector<128xf32>
    %36 = vector.shape_cast %35 : vector<128xf32> to vector<1x128xf32>
    %c0_17 = arith.constant 0 : index
    %c0_18 = arith.constant 0 : index
    %37 = vector.load %arg12[%c0_17, %c0_18] : memref<1x128xf32, #tpu.memory_space<vmem>>, vector<1x128xf32>
    %38 = arith.mulf %36, %7 : vector<1x128xf32>
    %39 = arith.addf %37, %38 : vector<1x128xf32>
    %c0_19 = arith.constant 0 : index
    %c0_20 = arith.constant 0 : index
    %40 = vector.load %arg12[%c0_19, %c0_20] : memref<1x128xf32, #tpu.memory_space<vmem>>, vector<1x128xf32>
    tpu.vector_store %arg12[%c0_19, %c0_20], %39 {strides = array<i32>} : memref<1x128xf32, #tpu.memory_space<vmem>>, vector<1x128xf32>,
    %c0_21 = arith.constant 0 : index
    %c0_22 = arith.constant 0 : index
    %41 = vector.load %arg13[%c0_21, %c0_22] : memref<1x128xf32, #tpu.memory_space<vmem>>, vector<1x128xf32>
    %42 = arith.addf %41, %7 : vector<1x128xf32>
    %c0_23 = arith.constant 0 : index
    %c0_24 = arith.constant 0 : index
    %43 = vector.load %arg13[%c0_23, %c0_24] : memref<1x128xf32, #tpu.memory_space<vmem>>, vector<1x128xf32>
    tpu.vector_store %arg13[%c0_23, %c0_24], %42 {strides = array<i32>} : memref<1x128xf32, #tpu.memory_space<vmem>>, vector<1x128xf32>,
    %c0_25 = arith.constant 0 : index
    %c0_26 = arith.constant 0 : index
    %44 = vector.load %arg14[%c0_25, %c0_26] : memref<3x128xf32, #tpu.memory_space<vmem>>, vector<3x128xf32>
    %45 = arith.addf %44, %34 : vector<3x128xf32>
    %c0_27 = arith.constant 0 : index
    %c0_28 = arith.constant 0 : index
    %46 = vector.load %arg14[%c0_27, %c0_28] : memref<3x128xf32, #tpu.memory_space<vmem>>, vector<3x128xf32>
    tpu.vector_store %arg14[%c0_27, %c0_28], %45 {strides = array<i32>} : memref<3x128xf32, #tpu.memory_space<vmem>>, vector<3x128xf32>,
    %c1_i32_29 = arith.constant 1 : i32
    %47 = arith.cmpi eq, %arg2, %c1_i32_29 : i32
    %48 = arith.extui %47 : i1 to i32
    %c0_i32_30 = arith.constant 0 : i32
    %49 = arith.cmpi ne, %48, %c0_i32_30 : i32
    scf.if %49 {
      %c0_31 = arith.constant 0 : index
      %c0_32 = arith.constant 0 : index
      %50 = vector.load %arg11[%c0_31, %c0_32] : memref<1x128xf32, #tpu.memory_space<vmem>>, vector<1x128xf32>
      %51 = vector.shape_cast %50 : vector<1x128xf32> to vector<1x1x128xf32>
      %cst_33 = arith.constant dense<0.000000e+00> : vector<1xf32>
      %52 = vector.multi_reduction <add>, %51, %cst_33 [1, 2] : vector<1x1x128xf32> to vector<1xf32>
      %53 = vector.shape_cast %52 : vector<1xf32> to vector<1x1x1xf32>
      %54 = vector.extract %53[0, 0, 0] : f32 from vector<1x1x1xf32>
      %55 = vector.broadcast %54 : f32 to vector<1x1xf32>
      %c0_34 = arith.constant 0 : index
      %c0_35 = arith.constant 0 : index
      %c0_36 = arith.constant 0 : index
      %c0_37 = arith.constant 0 : index
      %56 = vector.load %arg7[%c0_34, %c0_35, %c0_36, %c0_37] : memref<1x1x1x1xf32, #tpu.memory_space<vmem>>, vector<1x1x1x1xf32>
      %57 = vector.shape_cast %56 : vector<1x1x1x1xf32> to vector<1x1xf32>
      %58 = vector.shape_cast %55 : vector<1x1xf32> to vector<1x1x1x1xf32>
      tpu.vector_store %arg7[%c0_34, %c0_35, %c0_36, %c0_37], %58 {strides = array<i32>} : memref<1x1x1x1xf32, #tpu.memory_space<vmem>>, vector<1x1x1x1xf32>,
      %c0_38 = arith.constant 0 : index
      %c0_39 = arith.constant 0 : index
      %59 = vector.load %arg12[%c0_38, %c0_39] : memref<1x128xf32, #tpu.memory_space<vmem>>, vector<1x128xf32>
      %60 = vector.shape_cast %59 : vector<1x128xf32> to vector<1x1x128xf32>
      %cst_40 = arith.constant dense<0.000000e+00> : vector<1xf32>
      %61 = vector.multi_reduction <add>, %60, %cst_40 [1, 2] : vector<1x1x128xf32> to vector<1xf32>
      %62 = vector.shape_cast %61 : vector<1xf32> to vector<1x1x1xf32>
      %63 = vector.extract %62[0, 0, 0] : f32 from vector<1x1x1xf32>
      %64 = vector.broadcast %63 : f32 to vector<1x1xf32>
      %c0_41 = arith.constant 0 : index
      %c0_42 = arith.constant 0 : index
      %c0_43 = arith.constant 0 : index
      %c0_44 = arith.constant 0 : index
      %65 = vector.load %arg8[%c0_41, %c0_42, %c0_43, %c0_44] : memref<1x1x1x1xf32, #tpu.memory_space<vmem>>, vector<1x1x1x1xf32>
      %66 = vector.shape_cast %65 : vector<1x1x1x1xf32> to vector<1x1xf32>
      %67 = vector.shape_cast %64 : vector<1x1xf32> to vector<1x1x1x1xf32>
      tpu.vector_store %arg8[%c0_41, %c0_42, %c0_43, %c0_44], %67 {strides = array<i32>} : memref<1x1x1x1xf32, #tpu.memory_space<vmem>>, vector<1x1x1x1xf32>,
      %c0_45 = arith.constant 0 : index
      %c0_46 = arith.constant 0 : index
      %68 = vector.load %arg13[%c0_45, %c0_46] : memref<1x128xf32, #tpu.memory_space<vmem>>, vector<1x128xf32>
      %69 = vector.shape_cast %68 : vector<1x128xf32> to vector<1x1x128xf32>
      %cst_47 = arith.constant dense<0.000000e+00> : vector<1xf32>
      %70 = vector.multi_reduction <add>, %69, %cst_47 [1, 2] : vector<1x1x128xf32> to vector<1xf32>
      %71 = vector.shape_cast %70 : vector<1xf32> to vector<1x1x1xf32>
      %72 = vector.extract %71[0, 0, 0] : f32 from vector<1x1x1xf32>
      %73 = vector.broadcast %72 : f32 to vector<1x1xf32>
      %c0_48 = arith.constant 0 : index
      %c0_49 = arith.constant 0 : index
      %c0_50 = arith.constant 0 : index
      %c0_51 = arith.constant 0 : index
      %74 = vector.load %arg9[%c0_48, %c0_49, %c0_50, %c0_51] : memref<1x1x1x1xf32, #tpu.memory_space<vmem>>, vector<1x1x1x1xf32>
      %75 = vector.shape_cast %74 : vector<1x1x1x1xf32> to vector<1x1xf32>
      %76 = vector.shape_cast %73 : vector<1x1xf32> to vector<1x1x1x1xf32>
      tpu.vector_store %arg9[%c0_48, %c0_49, %c0_50, %c0_51], %76 {strides = array<i32>} : memref<1x1x1x1xf32, #tpu.memory_space<vmem>>, vector<1x1x1x1xf32>,
      %c0_52 = arith.constant 0 : index
      %c0_53 = arith.constant 0 : index
      %77 = vector.load %arg14[%c0_52, %c0_53] : memref<3x128xf32, #tpu.memory_space<vmem>>, vector<3x128xf32>
      %cst_54 = arith.constant dense<0.000000e+00> : vector<3xf32>
      %78 = vector.multi_reduction <add>, %77, %cst_54 [1] : vector<3x128xf32> to vector<3xf32>
      %79 = vector.shape_cast %78 : vector<3xf32> to vector<3x1xf32>
      %c0_55 = arith.constant 0 : index
      %c0_56 = arith.constant 0 : index
      %c0_57 = arith.constant 0 : index
      %c0_58 = arith.constant 0 : index
      %80 = vector.load %arg10[%c0_55, %c0_56, %c0_57, %c0_58] : memref<1x1x3x1xf32, #tpu.memory_space<vmem>>, vector<1x1x3x1xf32>
      %81 = vector.shape_cast %80 : vector<1x1x3x1xf32> to vector<3x1xf32>
      %82 = vector.shape_cast %79 : vector<3x1xf32> to vector<1x1x3x1xf32>
      tpu.vector_store %arg10[%c0_55, %c0_56, %c0_57, %c0_58], %82 {strides = array<i32>} : memref<1x1x3x1xf32, #tpu.memory_space<vmem>>, vector<1x1x3x1xf32>,
    } else {
    }
    return
  }
  func.func @transform_0(%arg0: i32, %arg1: i32, %arg2: i32) -> (i32, i32, i32) {
    %c2_i32 = arith.constant 2 : i32
    %0 = arith.muli %arg0, %c2_i32 : i32
    %1 = arith.addi %0, %arg2 : i32
    %c0_i32 = arith.constant 0 : i32
    %c0_i32_0 = arith.constant 0 : i32
    return %arg1, %c0_i32, %1 : i32, i32, i32
  }
  func.func @transform_1(%arg0: i32, %arg1: i32, %arg2: i32) -> (i32, i32, i32) {
    %c2_i32 = arith.constant 2 : i32
    %0 = arith.muli %arg0, %c2_i32 : i32
    %1 = arith.addi %0, %arg2 : i32
    %c0_i32 = arith.constant 0 : i32
    %c0_i32_0 = arith.constant 0 : i32
    return %arg1, %c0_i32, %1 : i32, i32, i32
  }
  func.func @transform_2(%arg0: i32, %arg1: i32, %arg2: i32) -> (i32, i32, i32) {
    %c2_i32 = arith.constant 2 : i32
    %0 = arith.muli %arg0, %c2_i32 : i32
    %1 = arith.addi %0, %arg2 : i32
    %c0_i32 = arith.constant 0 : i32
    %c0_i32_0 = arith.constant 0 : i32
    return %arg1, %c0_i32, %1 : i32, i32, i32
  }
  func.func @transform_3(%arg0: i32, %arg1: i32, %arg2: i32) -> (i32, i32, i32) {
    %c2_i32 = arith.constant 2 : i32
    %0 = arith.muli %arg0, %c2_i32 : i32
    %1 = arith.addi %0, %arg2 : i32
    %c0_i32 = arith.constant 0 : i32
    %c0_i32_0 = arith.constant 0 : i32
    return %arg1, %c0_i32, %1 : i32, i32, i32
  }
  func.func @transform_4(%arg0: i32, %arg1: i32, %arg2: i32) -> (i32, i32, i32, i32) {
    %c0_i32 = arith.constant 0 : i32
    %c0_i32_0 = arith.constant 0 : i32
    %c0_i32_1 = arith.constant 0 : i32
    return %arg0, %arg1, %c0_i32, %c0_i32_0 : i32, i32, i32, i32
  }
  func.func @transform_5(%arg0: i32, %arg1: i32, %arg2: i32) -> (i32, i32, i32, i32) {
    %c0_i32 = arith.constant 0 : i32
    %c0_i32_0 = arith.constant 0 : i32
    %c0_i32_1 = arith.constant 0 : i32
    return %arg0, %arg1, %c0_i32, %c0_i32_0 : i32, i32, i32, i32
  }
  func.func @transform_6(%arg0: i32, %arg1: i32, %arg2: i32) -> (i32, i32, i32, i32) {
    %c0_i32 = arith.constant 0 : i32
    %c0_i32_0 = arith.constant 0 : i32
    %c0_i32_1 = arith.constant 0 : i32
    return %arg0, %arg1, %c0_i32, %c0_i32_0 : i32, i32, i32, i32
  }
  func.func @transform_7(%arg0: i32, %arg1: i32, %arg2: i32) -> (i32, i32, i32, i32) {
    %c0_i32 = arith.constant 0 : i32
    %c0_i32_0 = arith.constant 0 : i32
    %c0_i32_1 = arith.constant 0 : i32
    return %arg0, %arg1, %c0_i32, %c0_i32_0 : i32, i32, i32, i32
  }
}

</mosaic_0001>

<bundles_post_ra>
// kernel: tpu_custom_call.1
= control target key start
LH: loop header
LB: loop body
LE: loop exit
PB: predicated region body
PF: predicated region fallthrough
CT: control target
= control target key end

     0   :  { %s1058_s24 = smov 0   ;;  %s1060_s25 = smov 0   ;;  %s1160_s0 = inlined_call_operand.vmem [shape: f32[2,2,256], index: 0, kind: input, shape index: {}]   ;;  %s1161_s1 = inlined_call_operand.vmem [shape: f32[2,3,256], index: 1, kind: input, shape index: {}]   ;;  %s1162_s2 = inlined_call_operand.vmem [shape: f32[2,3,256], index: 2, kind: input, shape index: {}]   ;;  %s1163_s3 = inlined_call_operand.vmem [shape: s32[2,1,256], index: 3, kind: input, shape index: {}]   ;;  %s1164_s4 = inlined_call_operand.vmem [shape: f32[1,2,1,1], index: 4, kind: output, shape index: {0}]   ;;  %s1165_s5 = inlined_call_operand.vmem [shape: f32[1,2,1,1], index: 5, kind: output, shape index: {1}]   ;;  %s1166_s6 = inlined_call_operand.vmem [shape: f32[1,2,1,1], index: 6, kind: output, shape index: {2}]   ;;  %s1167_s7 = inlined_call_operand.vmem [shape: f32[1,2,3,1], index: 7, kind: output, shape index: {3}]  }
   0x1   :  { %s1062_s26 = smov 0   ;;  %s1064_s27 = smov 0  }
   0x2   :  { %s1066_s28 = smov 0  }
   0x3 LB: > { %1170 = sst [smem:[#allocation6_spill]] %s1006_s26  ;;  %s30_s29 = sadd.s32 1, %s1006_s26  ;;  %s1014_s28 = sphi %s1066_s28, %s18_s28   ;;  %s1010_s27 = sphi %s1064_s27, %s1179_s27   ;;  %s1006_s26 = sphi %s1062_s26, %s1178_s26   ;;  %s1002_s25 = sphi %s1060_s25, %s1177_s25   ;;  %s998_s24 = sphi %s1058_s24, %s1176_s24  }
   0x4   : > { %1171 = sst [smem:[#allocation7_spill]] %s1010_s27  ;;  %s33_s30 = sadd.s32 1, %s1010_s27 }
   0x5   : > { %p31_p0 = scmp.ge.s32.totalorder %s30_s29, 2  ;;  %p911_p1 = scmp.ge.s32.totalorder %s1014_s28, 1 }
   0x6   : > { %p352_p2 = scmp.lt.s32.totalorder %s1014_s28, 5 }
   0x7   : > { %s1181_s29 = smov (%p31_p0, %s30_s29), 0  ;;  %s1183_s30 = smov (!%p31_p0, %s33_s30), %s1010_s27 }
   0x8   : > { %1172 = sst [smem:[#allocation8_spill]] %s1181_s29  ;;  %p353_p3 = pnand %p911_p1, %p352_p2 }
   0x9   : > { %p35_p4 = scmp.ge.s32.totalorder %s1183_s30, 2  ;;  %p444_p5 = scmp.lt.s32.totalorder (!%p353_p3), %s1002_s25, 1 }
   0xa   : > { %356 = sbr.rel (%p353_p3) target bundleno = 292 (0x124), region = 36  ;;  %p446_p6 = scmp.lt.s32.totalorder (!%p353_p3), %s998_s24, 1 }
   0xb   : > { %s1185_s30 = smov (%p35_p4, %s1183_s30), 0  ;;  %p920_p7 = scmp.ne.s32.totalorder (!%p353_p3), %s998_s24, 0 }
   0xc   : > { %1173 = sst [smem:[#allocation9_spill]] %s1185_s30 }
  0x11   : > { %s1187_s25 = smov (!%p444_p5, %s1002_s25), 1  ;;  %v1016_v0 = vmov (!%p920_p7), 0.0  }
  0x12   : > { %s447_s8 = scalar_select %p446_p6, %s998_s24, 1 }
  0x13   : > { %s912_s9 = sshll.u32 %s1187_s25, 1  ;;  %s509_s16 = scalar_lea.vmem %s1166_s6, %s1187_s25  ;;  %522 = vst [vmem:[#allocation2] sm:$0x1] (!%p920_p7), %v1016_v0  ;;  %523 = vst [vmem:[#allocation3] sm:$0x1] (!%p920_p7), %v1016_v0 }
  0x14   : > { %s449_s13 = sadd.s32 %s912_s9, %s447_s8  ;;  %s919_s12 = sshll.u32 %s1187_s25, 2  ;;  %524 = vst [vmem:[#allocation4] sm:$0x1] (!%p920_p7), %v1016_v0  ;;  %525 = vst [vmem:[#allocation5] sm:$0x7] (!%p920_p7), %v1016_v0 }
  0x15   : > { %s913_s17 = sshll.u32 %s449_s13, 1  ;;  %s915_s18 = sshll.u32 %s449_s13, 2 }
  0x16   : > { %s451_s21 = scalar_lea.vmem %s1160_s0, %s913_s17  ;;  %s463_s30 = scalar_lea.vmem %s1161_s1, %s915_s18 }
  0x17   : > { %s475_s10 = scalar_lea.vmem %s1162_s2, %s915_s18  ;;  %s486_s9 = scalar_lea.vmem %s1163_s3, %s449_s13 }
  0x18   : > { %s1123_s17 = scalar_lea.vmem %s1167_s7, %s919_s12  ;;  %521 = sbr.rel (%p920_p7) target bundleno = 31 (0x1f), region = 40 }
  0x1f PF: > { %v526_v1 = vld [vmem:[%s451_s21] sm:$0x3]  ;;  %v545_v3 = vlaneseq  ;;  %v587_v9 = vld [vmem:[#allocation4] sm:$0x1]  ;;  %v1017_v19 = vmov 1966171168  }
  0x20   : > { %v527_v2 = vld [vmem:[%s486_s9] sm:$0x1]  ;;  %v530_v4 = vrot.slane %v526_v1, 1  ;;  %v543_v20 = vunpack.c.l.s4 %v1017_v19  ;;  %vm575_vm0 = vcmask 1042432   ;;  %v590_v22 = vld [vmem:[#allocation5] sm:$0x7] }
  0x21   : > { %v546_v5 = vshrl.u32 %v545_v3, 7  ;;  %v528_v6 = vcvt.s32.f32 %v527_v2  ;;  %v563_v13 = vld [vmem:[%s475_s10] sm:$0x7]  ;;  %vm541_vm1 = vcmp.eq.s32.totalorder %v527_v2, 1  ;;  %p921_p8 = scmp.ne.s32.totalorder %s998_s24, 1 }
  0x22   : > { %v532_v7 = vmax.f32 %v526_v1, %v530_v4  ;;  %v533_v8 = vmin.f32 %v526_v1, %v530_v4  ;;  %v571_v14 = vld [vmem:[%s463_s30] sm:$0x7]  ;;  %v544_v24 = vunpack.c.0.s8 %v543_v20  ;;  %vm598_vm2 = vcmask (!%p921_p8), 1040384   ;;  %s1174_s29 = scalar_lea.vmem (!%p921_p8), %s1164_s4, %s1187_s25  ;;  %s1175_s20 = scalar_lea.vmem (!%p921_p8), %s1165_s5, %s1187_s25 }
  0x23   : > { %v567_v10 = vsub.s32 0, %v546_v5  ;;  %v588_v11 = vadd.f32 %v587_v9, %v528_v6  ;;  %v583_v38 = vld [vmem:[#allocation3] sm:$0x1]  ;;  %v559_v46 = vld [vmem:[#allocation2] sm:$0x1]  ;;  %vm642_vm3 = vcmask (!%p921_p8), 2048  }
  0x24   : > { %v534_v12 = vsub.f32 %v533_v8, %v532_v7  ;;  %v547_v29 = vsub.s32 %v544_v24, %v546_v5  ;;  %vm610_vm4 = vcmask (!%p921_p8), 0  }
  0x25   : > { %v568_v15 = vrot.slane %v528_v6, %v567_v10  ;;  %589 = vst [vmem:[#allocation4] sm:$0x1] %v588_v11 }
  0x26   : > { %v535_v16 = vmul.f32 1.442695, %v534_v12  ;;  %v548_v34 = vrot.slane %v526_v1, %v547_v29 }
  0x27   : > { %v570_v17 = vmul.f32 %v568_v15, %v563_v13  ;;  %v572_v18 = vmul.f32 %v571_v14, %v568_v15 }
  0x28   : > { %972 = vpow2.f32 %v535_v16  ;;  %v549_v37 = vcombine.high %v548_v34, %v548_v34 }
  0x29   : > { %v573_v21 = vsub.f32 %v572_v18, %v570_v17 }
  0x2a   : > { %v556_v41 = vrot.slane %v549_v37, %v547_v29 }
  0x2b   : > { %v574_v23 = vand.u32 2147483647, %v573_v21 }
  0x2c   : > { %v558_v44 = vsel %vm541_vm1, %v556_v41, %v526_v1  ;;  %v625_v49 = vld [vmem:[#allocation4] sm:$0x1] (!%p921_p8) }
  0x2d   : > { %v576_v25 = vsel %vm575_vm0, %v574_v23, 0.0  ;;  %v591_v26 = vadd.f32 %v590_v22, %v574_v23  ;;  %v626_v51 = vsel (!%p921_p8), %vm598_vm2, %v625_v49, 0.0 }
  0x2e   : > { %v577_v27 = vrot.slane %v576_v25, 4  ;;  %627 = vadd.xlane.f32.xlu1 (!%p921_p8), %v626_v51 }
  0x2f   : > { %592 = vst [vmem:[#allocation5] sm:$0x7] %v591_v26 }
  0x30   : > { %v578_v28 = vadd.f32 %v577_v27, %v576_v25 }
  0x32   : > { %v973_v30 = vpop.eup %972  ;;  %v579_v31 = vrot.slane %v578_v28, 2 }
  0x33   : > { %v537_v32 = vadd.f32 1.0, %v973_v30 }
  0x34   : > { %v580_v33 = vadd.f32 %v579_v31, %v578_v28 }
  0x35   : > { %974 = vlog2.f32 %v537_v32 }
  0x36   : > { %v581_v35 = vrot.slane %v580_v33, 1  ;;  %v638_v54 = vld [vmem:[#allocation5] sm:$0x7] (!%p921_p8) }
  0x37   : > { %v639_v56 = vsel (!%p921_p8), %vm575_vm0, %v638_v54, 0.0 }
  0x38   : > { %v582_v36 = vadd.f32 %v581_v35, %v580_v33  ;;  %640 = vadd.xlane.f32.xlu1 (!%p921_p8), %v639_v56 }
  0x3a   : > { %v584_v39 = vmul.f32 %v582_v36, %v528_v6 }
  0x3c   : > { %v585_v40 = vadd.f32 %v584_v39, %v583_v38 }
  0x3e   : > { %586 = vst [vmem:[#allocation3] sm:$0x1] %v585_v40 }
  0x3f   : > { %v975_v42 = vpop.eup %974 }
  0x40   : > { %v539_v43 = vmul.f32 0.6931472, %v975_v42 }
  0x42   : > { %v540_v45 = vadd.f32 %v539_v43, %v532_v7  ;;  %596 = sbr.rel (%p921_p8) target bundleno = 292 (0x124), region = 44 }
  0x44   : > { %v560_v47 = vsub.f32 %v540_v45, %v558_v44 }
  0x45   : > { %v612_v53 = vld [vmem:[#allocation3] sm:$0x1] (!%p921_p8) }
  0x46   : > { %v561_v48 = vadd.f32 %v560_v47, %v559_v46  ;;  %v613_v55 = vsel (!%p921_p8), %vm598_vm2, %v612_v53, 0.0 }
  0x48   : > { %562 = vst [vmem:[#allocation2] sm:$0x1] %v561_v48 }
  0x4f   : > { %v597_v50 = vld [vmem:[#allocation2] sm:$0x1] }
  0x50   : > { %v599_v52 = vsel %vm598_vm2, %v597_v50, 0.0 }
  0x51   : > { %600 = vadd.xlane.f32.xlu0 %v599_v52 }
  0x55   : > { %614 = vadd.xlane.f32.xlu0 %v613_v55 }
  0xbb   : > { %v628_v57 = vpop.xlane.xlu1 %627 }
  0xbc   : > { %v629_v59 = vrot.slane %v628_v57, 4 }
  0xbe   : > { %v630_v61 = vadd.f32 %v629_v59, %v628_v57 }
  0xc0   : > { %v631_v1 = vrot.slane %v630_v61, 2 }
  0xc2   : > { %v632_v6 = vadd.f32 %v631_v1, %v630_v61 }
  0xc4   : > { %v633_v11 = vrot.slane %v632_v6, 1 }
  0xc5   : > { %v641_v0 = vpop.xlane.xlu1 %640 }
  0xc6   : > { %643 = vst.msk [vmem:[%s1123_s17] sm:$0x7] %vm642_vm3, %v641_v0  ;;  %v634_v14 = vadd.f32 %v633_v11, %v632_v6 }
  0xde   : > { %v601_v58 = vpop.xlane.xlu0 %600 }
  0xdf   : > { %v602_v60 = vrot.slane %v601_v58, 4 }
  0xe1   : > { %v603_v62 = vadd.f32 %v602_v60, %v601_v58 }
  0xe2   : > { %v615_v63 = vpop.xlane.xlu0 %614 }
  0xe3   : > { %v604_v2 = vrot.slane %v603_v62, 2  ;;  %v616_v3 = vrot.slane %v615_v63, 4 }
  0xe5   : > { %v617_v4 = vadd.f32 %v616_v3, %v615_v63  ;;  %v605_v5 = vadd.f32 %v604_v2, %v603_v62 }
  0xe7   : > { %v618_v7 = vrot.slane %v617_v4, 2  ;;  %v606_v8 = vrot.slane %v605_v5, 1 }
  0xe9   : > { %v619_v9 = vadd.f32 %v618_v7, %v617_v4  ;;  %v607_v10 = vadd.f32 %v606_v8, %v605_v5 }
  0xeb   : > { %924 = vpush %v607_v10  ;;  %v620_v12 = vrot.slane %v619_v9, 1 }
  0xed   : > { %v621_v13 = vadd.f32 %v620_v12, %v619_v9 }
  0xef   : > { %926 = vpush %v621_v13 }
  0xf0   : > { %928 = vpush %v634_v14 }
 0x11c   : > { %s925_s24 = spop %924 }
 0x11d   : > { %v609_v15 = vstv %s925_s24 }
 0x11e   : > { %611 = vst.msk [vmem:[%s1174_s29] sm:$0x1] %vm610_vm4, %v609_v15 }
 0x120   : > { %s927_s30 = spop %926 }
 0x121   : > { %v623_v16 = vstv %s927_s30  ;;  %s929_s12 = spop %928 }
 0x122   : > { %624 = vst.msk [vmem:[%s1175_s20] sm:$0x1] %vm610_vm4, %v623_v16  ;;  %v636_v17 = vstv %s929_s12 }
 0x123   : > { %637 = vst.msk [vmem:[%s509_s16] sm:$0x1] %vm610_vm4, %v636_v17 }
 0x124 PF: > { %s18_s28 = sadd.s32 1, %s1014_s28   ;;  %s1176_s24 = sld [smem:[#allocation6_spill]] }
 0x125   : > { %p15_p9 = scmp.ge.s32.totalorder %s18_s28, 6   ;;  %s1177_s25 = sld [smem:[#allocation7_spill]] }
 0x126   : > { %s1178_s26 = sld [smem:[#allocation8_spill]]  ;;  %s1179_s27 = sld [smem:[#allocation9_spill]] }
 0x127   :  { %17 = sbr.rel (!%p15_p9) target bundleno = 3 (0x3), region = 119 }

</bundles_post_ra>
